<compile_context>
chip_gen: v6e
topology: v6e:2x2x1
jax: 0.10.0
libtpu: 0.0.40
codegen_flags: <defaults>
</compile_context>

<pallas_src>
import functools

import numpy as np

import jax
import jax.numpy as jnp
from jax import lax
from jax.experimental import pallas as pl
from jax.experimental.pallas import tpu as pltpu

KSZ = 3          # kernel_size (module default)
K_EXPERTS = 4    # number of experts (module default K=4)


# ---------------------------------------------------------------------------
# Fused kernel: attention + weight mixing + dilated 3x3 conv, one sample block
# ---------------------------------------------------------------------------
def dcond_conv_kernel(x_ref, awt_ref, ab_ref, bank_ref, mask_ref, o_ref, *,
                      H, W, d, matmul_dtype):
    # x_ref   : (BN, Cin, HW)        BN samples, spatial flattened on lanes (f32)
    # awt_ref : (K, Cin)             attention 1x1-conv weight (resident block)
    # ab_ref  : (K, 1)               attention 1x1-conv bias   (resident block)
    # bank_ref: (K, Cout, 9*Cin)     expert bank, (Cout, kh, kw, Cin) order (resident)
    # mask_ref: (9, 1, HW)           per-tap zero-padding validity masks (resident)
    # o_ref   : (BN, Cout, HW)
    HW = H * W
    BN, Cin, _ = x_ref.shape
    K = awt_ref.shape[0]

    awt = awt_ref[...]                                         # (K, Cin)  f32
    ab = ab_ref[...]                                           # (K, 1)    f32

    for b in range(BN):                                        # static per-block loop
        x_f32 = x_ref[b]                                       # (Cin, HW) f32

        # ---- fused Attention: sigmoid(Conv1x1(avgpool(x))) --------------------
        # mean_p(W @ x) == W @ mean_p(x) by linearity; avoids an N=1 matmul shape.
        logits = jnp.mean(
            jnp.dot(awt, x_f32, preferred_element_type=jnp.float32),
            axis=1, keepdims=True) + ab                        # (K, 1)
        att = jax.nn.sigmoid(logits)                           # (K, 1)

        # ---- per-sample aggregated weights: sum_k att[k] * bank[k] ------------
        w = att[0:1, 0:1] * bank_ref[0]                        # (Cout, 9*Cin) f32
        for k in range(1, K):
            w = w + att[k:k + 1, 0:1] * bank_ref[k]
        w_mm = w.astype(matmul_dtype)                          # single cast

        # ---- build the 9 dilated taps as one (9*Cin, HW) matmul operand -------
        x_mm = x_f32.astype(matmul_dtype)                      # single cast (no-op f32)
        taps = []
        for kh in range(KSZ):
            for kw in range(KSZ):
                t = kh * KSZ + kw
                off = (kh - KSZ // 2) * d * W + (kw - KSZ // 2) * d   # static offset
                if off == 0:
                    x_sh = x_mm
                else:
                    # circular lane roll; wrapped / out-of-image lanes are zeroed by
                    # the precomputed mask (reproduces zero padding).
                    x_sh = pltpu.roll(x_mm, (-off) % HW, axis=1)
                taps.append(x_sh * mask_ref[t])                # (Cin, HW)
        x_taps = jnp.concatenate(taps, axis=0)                 # (9*Cin, HW)

        # ---- one weights-stationary MXU matmul, contraction dim = 9*Cin -------
        out = jnp.dot(w_mm, x_taps, preferred_element_type=jnp.float32)  # (Cout, HW)
        o_ref[b] = out.astype(o_ref.dtype)


# ---------------------------------------------------------------------------
# Host-side helpers
# ---------------------------------------------------------------------------
def _tap_masks(H, W, d, dtype):
    """(9, 1, H*W) validity masks reproducing zero padding; compile-time constant."""
    HW = H * W
    p = np.arange(HW)
    rows, cols = p // W, p % W
    m = np.zeros((KSZ * KSZ, 1, HW), np.float32)
    for kh in range(KSZ):
        for kw in range(KSZ):
            oh, ow = (kh - KSZ // 2) * d, (kw - KSZ // 2) * d
            valid = ((rows + oh >= 0) & (rows + oh < H) &
                     (cols + ow >= 0) & (cols + ow < W))
            m[kh * KSZ + kw, 0, :] = valid
    return jnp.asarray(m, dtype=dtype)


def prepare_params(att_w, att_b, weight_bank):
    """Parameter-only preprocessing, done ONCE (outside the jitted forward)."""
    K, Cout, Cin, KH, KW = weight_bank.shape
    assert KH == KSZ and KW == KSZ
    # (K, Cout, Cin, 3, 3) -> (K, Cout, kh, kw, Cin) -> (K, Cout, 9*Cin): mixed weights
    # come out directly in the layout the conv matmul consumes (no per-sample permute).
    bank3 = jnp.transpose(weight_bank, (0, 1, 3, 4, 2)).reshape(
        K, Cout, KH * KW * Cin).astype(jnp.float32)
    return (att_w.astype(jnp.float32),
            att_b.reshape(K, 1).astype(jnp.float32),
            bank3)


def dcond_conv_forward(x_nchw, att_w, att_b2, bank3, *, d,
                       matmul_dtype=jnp.float32, samples_per_block=1):
    """DCondConv forward (stride=1, groups=1, kernel_size=3, padding=dilation=d)."""
    N, Cin, H, W = x_nchw.shape
    K, Cout, F9 = bank3.shape
    assert F9 == KSZ * KSZ * Cin
    assert att_w.shape == (K, Cin) and att_b2.shape == (K, 1)
    HW = H * W                                   # keep HW a multiple of 128 if possible
    bn = samples_per_block
    assert N % bn == 0

    # channels-on-sublanes / spatial-on-lanes; free reshape from NCHW
    x = x_nchw.reshape(N, Cin, HW).astype(jnp.float32)
    masks = _tap_masks(H, W, d, matmul_dtype)                  # (9, 1, HW), constant

    conv = pl.pallas_call(
        functools.partial(dcond_conv_kernel, H=H, W=W, d=d,
                          matmul_dtype=matmul_dtype),
        out_shape=jax.ShapeDtypeStruct((N, Cout, HW), jnp.float32),
        grid=(N // bn,),
        in_specs=[
            pl.BlockSpec((bn, Cin, HW), lambda n: (n, 0, 0)),
            # constant block index -> parameters / masks stay resident across the grid
            pl.BlockSpec((K, Cin), lambda n: (0, 0)),
            pl.BlockSpec((K, 1), lambda n: (0, 0)),
            pl.BlockSpec((K, Cout, F9), lambda n: (0, 0, 0)),
            pl.BlockSpec((KSZ * KSZ, 1, HW), lambda n: (0, 0, 0)),
        ],
        out_specs=pl.BlockSpec((bn, Cout, HW), lambda n: (n, 0, 0)),
        compiler_params=pltpu.CompilerParams(
            dimension_semantics=("parallel",),            # >=2 iters at N=2 -> v7x 2 TCs
            vmem_limit_bytes=48 * 1024 * 1024),           # >32 MiB, within v7x 64 MiB/TC
    )(x, att_w, att_b2, bank3, masks)

    return conv.reshape(N, Cout, H, W)                         # NCHW, free reshape


# ---------------------------------------------------------------------------
# Pure-JAX reference (faithful to the PyTorch module, for correctness check)
# ---------------------------------------------------------------------------
def ref_forward(x_nchw, att_w, att_b, weight_bank, *, d):
    N, Cin, H, W = x_nchw.shape
    K, Cout = weight_bank.shape[:2]
    x = x_nchw.astype(jnp.float32)
    pooled = jnp.mean(x, axis=(2, 3))                              # (N, Cin)
    att = jax.nn.sigmoid(pooled @ att_w.T + att_b)                 # (N, K)
    agg = (att @ weight_bank.reshape(K, -1)).reshape(N, Cout, Cin, KSZ, KSZ)
    outs = []
    for n in range(N):   # grouped conv with groups=N == per-sample conv
        o = lax.conv_general_dilated(
            x[n:n + 1], agg[n], window_strides=(1, 1),
            padding=[(d, d), (d, d)], rhs_dilation=(d, d),
            dimension_numbers=("NCHW", "OIHW", "NCHW"))
        outs.append(o)
    return jnp.concatenate(outs, axis=0)


# ---------------------------------------------------------------------------
if __name__ == "__main__":
    N, Cin, H, W = 2, 8, 16, 16
    Cout = 8
    d = 3                                # dilation = padding = d

    key = jax.random.PRNGKey(0)
    kx, k0, k1, k2 = jax.random.split(key, 4)
    x = jax.random.normal(kx, (N, Cin, H, W), jnp.float32)
    att_w = 0.5 * jax.random.normal(k0, (K_EXPERTS, Cin), jnp.float32)
    att_b = 0.1 * jax.random.normal(k1, (K_EXPERTS,), jnp.float32)
    weight_bank = 0.1 * jax.random.normal(
        k2, (K_EXPERTS, Cout, Cin, KSZ, KSZ), jnp.float32)

    ref = ref_forward(x, att_w, att_b, weight_bank, d=d)

    # parameter-only preprocessing hoisted out of the per-forward path (once)
    awt, ab2, bank3 = prepare_params(att_w, att_b, weight_bank)

    # f32 MXU operands (default; recommended on v5e)
    fwd = jax.jit(functools.partial(dcond_conv_forward, d=d))
    out = fwd(x, awt, ab2, bank3)
    jax.block_until_ready(out)
    assert out.shape == (N, Cout, H, W), out.shape
    assert jnp.allclose(out, ref, atol=1e-3, rtol=1e-3), \
        float(jnp.max(jnp.abs(out - ref)))

    # bf16 MXU operands with f32 accumulation (recommended on v6e/v7x)
    fwd_bf16 = jax.jit(functools.partial(dcond_conv_forward, d=d,
                                         matmul_dtype=jnp.bfloat16))
    out_bf16 = fwd_bf16(x, awt, ab2, bank3)
    jax.block_until_ready(out_bf16)
    assert jnp.allclose(out_bf16, ref, atol=5e-2, rtol=5e-2), \
        float(jnp.max(jnp.abs(out_bf16 - ref)))

    print("KERNEL_OK")
</pallas_src>

<mosaic_0001>
module attributes {stable_mosaic.version = 11 : i64} {
  func.func @dcond_conv_kernel(%arg0: i32, %arg1: memref<1x8x256xf32, #tpu.memory_space<vmem>>, %arg2: memref<4x8xf32, #tpu.memory_space<vmem>>, %arg3: memref<4x1xf32, #tpu.memory_space<vmem>>, %arg4: memref<4x8x72xf32, #tpu.memory_space<vmem>>, %arg5: memref<9x1x256xf32, #tpu.memory_space<vmem>>, %arg6: memref<1x8x256xf32, #tpu.memory_space<vmem>>) attributes {dimension_semantics = [#tpu.dimension_semantics<parallel>], iteration_bounds = array<i64: 2>, scalar_prefetch = 0 : i64, scratch_operands = 0 : i64, tpu.core_type = #tpu.core_type<tc>, window_params = [{transform_indices = @transform_0, window_bounds = array<i64: 1, 8, 256>}, {pipeline_mode = #tpu.pipeline_mode<synchronous>, transform_indices = @transform_1, window_bounds = array<i64: 4, 8>}, {pipeline_mode = #tpu.pipeline_mode<synchronous>, transform_indices = @transform_2, window_bounds = array<i64: 4, 1>}, {pipeline_mode = #tpu.pipeline_mode<synchronous>, transform_indices = @transform_3, window_bounds = array<i64: 4, 8, 72>}, {pipeline_mode = #tpu.pipeline_mode<synchronous>, transform_indices = @transform_4, window_bounds = array<i64: 9, 1, 256>}, {transform_indices = @transform_5, window_bounds = array<i64: 1, 8, 256>}]} {
    %c0 = arith.constant 0 : index
    %c0_0 = arith.constant 0 : index
    %0 = vector.load %arg2[%c0, %c0_0] : memref<4x8xf32, #tpu.memory_space<vmem>>, vector<4x8xf32>
    %c0_1 = arith.constant 0 : index
    %c0_2 = arith.constant 0 : index
    %1 = vector.load %arg3[%c0_1, %c0_2] : memref<4x1xf32, #tpu.memory_space<vmem>>, vector<4x1xf32>
    %c0_3 = arith.constant 0 : index
    %c0_4 = arith.constant 0 : index
    %c0_5 = arith.constant 0 : index
    %2 = vector.load %arg1[%c0_3, %c0_4, %c0_5] : memref<1x8x256xf32, #tpu.memory_space<vmem>>, vector<1x8x256xf32>
    %3 = vector.shape_cast %2 : vector<1x8x256xf32> to vector<8x256xf32>
    %cst = arith.constant dense<0.000000e+00> : vector<4x256xf32>
    %4 = tpu.matmul %0, %3, %cst {dimension_numbers = #tpu.dot_dimension_numbers<[1], [0], [0], [1], [0, 0, 1, 1], [], []>} : vector<4x8xf32>, vector<8x256xf32>, vector<4x256xf32> -> vector<4x256xf32>
    %cst_6 = arith.constant dense<0.000000e+00> : vector<4xf32>
    %5 = vector.multi_reduction <add>, %4, %cst_6 [1] : vector<4x256xf32> to vector<4xf32>
    %6 = vector.shape_cast %5 : vector<4xf32> to vector<4x1xf32>
    %cst_7 = arith.constant 2.560000e+02 : f32
    %7 = vector.broadcast %cst_7 : f32 to vector<4x1xf32>
    %8 = arith.divf %6, %7 : vector<4x1xf32>
    %9 = arith.addf %8, %1 : vector<4x1xf32>
    %10 = arith.negf %9 : vector<4x1xf32>
    %11 = math.exp %10 : vector<4x1xf32>
    %cst_8 = arith.constant 1.000000e+00 : f32
    %12 = vector.broadcast %cst_8 : f32 to vector<4x1xf32>
    %13 = arith.addf %12, %11 : vector<4x1xf32>
    %14 = arith.divf %12, %13 : vector<4x1xf32>
    %15 = vector.extract_strided_slice %14 {offsets = [0, 0], sizes = [1, 1], strides = [1, 1]} : vector<4x1xf32> to vector<1x1xf32>
    %c0_9 = arith.constant 0 : index
    %c0_10 = arith.constant 0 : index
    %c0_11 = arith.constant 0 : index
    %16 = vector.load %arg4[%c0_9, %c0_10, %c0_11] : memref<4x8x72xf32, #tpu.memory_space<vmem>>, vector<1x8x72xf32>
    %17 = vector.shape_cast %16 : vector<1x8x72xf32> to vector<8x72xf32>
    %18 = vector.broadcast %15 : vector<1x1xf32> to vector<8x72xf32>
    %19 = arith.mulf %18, %17 : vector<8x72xf32>
    %20 = vector.extract_strided_slice %14 {offsets = [1, 0], sizes = [1, 1], strides = [1, 1]} : vector<4x1xf32> to vector<1x1xf32>
    %c1 = arith.constant 1 : index
    %c0_12 = arith.constant 0 : index
    %c0_13 = arith.constant 0 : index
    %21 = vector.load %arg4[%c1, %c0_12, %c0_13] : memref<4x8x72xf32, #tpu.memory_space<vmem>>, vector<1x8x72xf32>
    %22 = vector.shape_cast %21 : vector<1x8x72xf32> to vector<8x72xf32>
    %23 = vector.broadcast %20 : vector<1x1xf32> to vector<8x72xf32>
    %24 = arith.mulf %23, %22 : vector<8x72xf32>
    %25 = arith.addf %19, %24 : vector<8x72xf32>
    %26 = vector.extract_strided_slice %14 {offsets = [2, 0], sizes = [1, 1], strides = [1, 1]} : vector<4x1xf32> to vector<1x1xf32>
    %c2 = arith.constant 2 : index
    %c0_14 = arith.constant 0 : index
    %c0_15 = arith.constant 0 : index
    %27 = vector.load %arg4[%c2, %c0_14, %c0_15] : memref<4x8x72xf32, #tpu.memory_space<vmem>>, vector<1x8x72xf32>
    %28 = vector.shape_cast %27 : vector<1x8x72xf32> to vector<8x72xf32>
    %29 = vector.broadcast %26 : vector<1x1xf32> to vector<8x72xf32>
    %30 = arith.mulf %29, %28 : vector<8x72xf32>
    %31 = arith.addf %25, %30 : vector<8x72xf32>
    %32 = vector.extract_strided_slice %14 {offsets = [3, 0], sizes = [1, 1], strides = [1, 1]} : vector<4x1xf32> to vector<1x1xf32>
    %c3 = arith.constant 3 : index
    %c0_16 = arith.constant 0 : index
    %c0_17 = arith.constant 0 : index
    %33 = vector.load %arg4[%c3, %c0_16, %c0_17] : memref<4x8x72xf32, #tpu.memory_space<vmem>>, vector<1x8x72xf32>
    %34 = vector.shape_cast %33 : vector<1x8x72xf32> to vector<8x72xf32>
    %35 = vector.broadcast %32 : vector<1x1xf32> to vector<8x72xf32>
    %36 = arith.mulf %35, %34 : vector<8x72xf32>
    %37 = arith.addf %31, %36 : vector<8x72xf32>
    %c51_i32 = arith.constant 51 : i32
    %38 = tpu.dynamic_rotate %3 by %c51_i32 dim 1 : vector<8x256xf32>, i32 -> vector<8x256xf32>
    %c0_18 = arith.constant 0 : index
    %c0_19 = arith.constant 0 : index
    %c0_20 = arith.constant 0 : index
    %39 = vector.load %arg5[%c0_18, %c0_19, %c0_20] : memref<9x1x256xf32, #tpu.memory_space<vmem>>, vector<1x1x256xf32>
    %40 = vector.shape_cast %39 : vector<1x1x256xf32> to vector<1x256xf32>
    %41 = vector.broadcast %40 : vector<1x256xf32> to vector<8x256xf32>
    %42 = arith.mulf %38, %41 : vector<8x256xf32>
    %c48_i32 = arith.constant 48 : i32
    %43 = tpu.dynamic_rotate %3 by %c48_i32 dim 1 : vector<8x256xf32>, i32 -> vector<8x256xf32>
    %c1_21 = arith.constant 1 : index
    %c0_22 = arith.constant 0 : index
    %c0_23 = arith.constant 0 : index
    %44 = vector.load %arg5[%c1_21, %c0_22, %c0_23] : memref<9x1x256xf32, #tpu.memory_space<vmem>>, vector<1x1x256xf32>
    %45 = vector.shape_cast %44 : vector<1x1x256xf32> to vector<1x256xf32>
    %46 = vector.broadcast %45 : vector<1x256xf32> to vector<8x256xf32>
    %47 = arith.mulf %43, %46 : vector<8x256xf32>
    %c45_i32 = arith.constant 45 : i32
    %48 = tpu.dynamic_rotate %3 by %c45_i32 dim 1 : vector<8x256xf32>, i32 -> vector<8x256xf32>
    %c2_24 = arith.constant 2 : index
    %c0_25 = arith.constant 0 : index
    %c0_26 = arith.constant 0 : index
    %49 = vector.load %arg5[%c2_24, %c0_25, %c0_26] : memref<9x1x256xf32, #tpu.memory_space<vmem>>, vector<1x1x256xf32>
    %50 = vector.shape_cast %49 : vector<1x1x256xf32> to vector<1x256xf32>
    %51 = vector.broadcast %50 : vector<1x256xf32> to vector<8x256xf32>
    %52 = arith.mulf %48, %51 : vector<8x256xf32>
    %c3_i32 = arith.constant 3 : i32
    %53 = tpu.dynamic_rotate %3 by %c3_i32 dim 1 : vector<8x256xf32>, i32 -> vector<8x256xf32>
    %c3_27 = arith.constant 3 : index
    %c0_28 = arith.constant 0 : index
    %c0_29 = arith.constant 0 : index
    %54 = vector.load %arg5[%c3_27, %c0_28, %c0_29] : memref<9x1x256xf32, #tpu.memory_space<vmem>>, vector<1x1x256xf32>
    %55 = vector.shape_cast %54 : vector<1x1x256xf32> to vector<1x256xf32>
    %56 = vector.broadcast %55 : vector<1x256xf32> to vector<8x256xf32>
    %57 = arith.mulf %53, %56 : vector<8x256xf32>
    %c4 = arith.constant 4 : index
    %c0_30 = arith.constant 0 : index
    %c0_31 = arith.constant 0 : index
    %58 = vector.load %arg5[%c4, %c0_30, %c0_31] : memref<9x1x256xf32, #tpu.memory_space<vmem>>, vector<1x1x256xf32>
    %59 = vector.shape_cast %58 : vector<1x1x256xf32> to vector<1x256xf32>
    %60 = vector.broadcast %59 : vector<1x256xf32> to vector<8x256xf32>
    %61 = arith.mulf %3, %60 : vector<8x256xf32>
    %c253_i32 = arith.constant 253 : i32
    %62 = tpu.dynamic_rotate %3 by %c253_i32 dim 1 : vector<8x256xf32>, i32 -> vector<8x256xf32>
    %c5 = arith.constant 5 : index
    %c0_32 = arith.constant 0 : index
    %c0_33 = arith.constant 0 : index
    %63 = vector.load %arg5[%c5, %c0_32, %c0_33] : memref<9x1x256xf32, #tpu.memory_space<vmem>>, vector<1x1x256xf32>
    %64 = vector.shape_cast %63 : vector<1x1x256xf32> to vector<1x256xf32>
    %65 = vector.broadcast %64 : vector<1x256xf32> to vector<8x256xf32>
    %66 = arith.mulf %62, %65 : vector<8x256xf32>
    %c211_i32 = arith.constant 211 : i32
    %67 = tpu.dynamic_rotate %3 by %c211_i32 dim 1 : vector<8x256xf32>, i32 -> vector<8x256xf32>
    %c6 = arith.constant 6 : index
    %c0_34 = arith.constant 0 : index
    %c0_35 = arith.constant 0 : index
    %68 = vector.load %arg5[%c6, %c0_34, %c0_35] : memref<9x1x256xf32, #tpu.memory_space<vmem>>, vector<1x1x256xf32>
    %69 = vector.shape_cast %68 : vector<1x1x256xf32> to vector<1x256xf32>
    %70 = vector.broadcast %69 : vector<1x256xf32> to vector<8x256xf32>
    %71 = arith.mulf %67, %70 : vector<8x256xf32>
    %c208_i32 = arith.constant 208 : i32
    %72 = tpu.dynamic_rotate %3 by %c208_i32 dim 1 : vector<8x256xf32>, i32 -> vector<8x256xf32>
    %c7 = arith.constant 7 : index
    %c0_36 = arith.constant 0 : index
    %c0_37 = arith.constant 0 : index
    %73 = vector.load %arg5[%c7, %c0_36, %c0_37] : memref<9x1x256xf32, #tpu.memory_space<vmem>>, vector<1x1x256xf32>
    %74 = vector.shape_cast %73 : vector<1x1x256xf32> to vector<1x256xf32>
    %75 = vector.broadcast %74 : vector<1x256xf32> to vector<8x256xf32>
    %76 = arith.mulf %72, %75 : vector<8x256xf32>
    %c205_i32 = arith.constant 205 : i32
    %77 = tpu.dynamic_rotate %3 by %c205_i32 dim 1 : vector<8x256xf32>, i32 -> vector<8x256xf32>
    %c8 = arith.constant 8 : index
    %c0_38 = arith.constant 0 : index
    %c0_39 = arith.constant 0 : index
    %78 = vector.load %arg5[%c8, %c0_38, %c0_39] : memref<9x1x256xf32, #tpu.memory_space<vmem>>, vector<1x1x256xf32>
    %79 = vector.shape_cast %78 : vector<1x1x256xf32> to vector<1x256xf32>
    %80 = vector.broadcast %79 : vector<1x256xf32> to vector<8x256xf32>
    %81 = arith.mulf %77, %80 : vector<8x256xf32>
    %82 = tpu.concatenate %42, %47, %52, %57, %61, %66, %71, %76, %81 in 0 : vector<8x256xf32>, vector<8x256xf32>, vector<8x256xf32>, vector<8x256xf32>, vector<8x256xf32>, vector<8x256xf32>, vector<8x256xf32>, vector<8x256xf32>, vector<8x256xf32> -> vector<72x256xf32>
    %cst_40 = arith.constant dense<0.000000e+00> : vector<8x256xf32>
    %83 = tpu.matmul %37, %82, %cst_40 {dimension_numbers = #tpu.dot_dimension_numbers<[1], [0], [0], [1], [0, 0, 1, 1], [], []>} : vector<8x72xf32>, vector<72x256xf32>, vector<8x256xf32> -> vector<8x256xf32>
    %c0_41 = arith.constant 0 : index
    %c0_42 = arith.constant 0 : index
    %c0_43 = arith.constant 0 : index
    %84 = vector.load %arg6[%c0_41, %c0_42, %c0_43] : memref<1x8x256xf32, #tpu.memory_space<vmem>>, vector<1x8x256xf32>
    %85 = vector.shape_cast %84 : vector<1x8x256xf32> to vector<8x256xf32>
    %86 = vector.shape_cast %83 : vector<8x256xf32> to vector<1x8x256xf32>
    tpu.vector_store %arg6[%c0_41, %c0_42, %c0_43], %86 {strides = array<i32>} : memref<1x8x256xf32, #tpu.memory_space<vmem>>, vector<1x8x256xf32>,
    return
  }
  func.func @transform_0(%arg0: i32) -> (i32, i32, i32) {
    %c0_i32 = arith.constant 0 : i32
    %c0_i32_0 = arith.constant 0 : i32
    %c0_i32_1 = arith.constant 0 : i32
    return %arg0, %c0_i32, %c0_i32_0 : i32, i32, i32
  }
  func.func @transform_1(%arg0: i32) -> (i32, i32) {
    %c0_i32 = arith.constant 0 : i32
    %c0_i32_0 = arith.constant 0 : i32
    %c0_i32_1 = arith.constant 0 : i32
    return %c0_i32, %c0_i32_0 : i32, i32
  }
  func.func @transform_2(%arg0: i32) -> (i32, i32) {
    %c0_i32 = arith.constant 0 : i32
    %c0_i32_0 = arith.constant 0 : i32
    %c0_i32_1 = arith.constant 0 : i32
    return %c0_i32, %c0_i32_0 : i32, i32
  }
  func.func @transform_3(%arg0: i32) -> (i32, i32, i32) {
    %c0_i32 = arith.constant 0 : i32
    %c0_i32_0 = arith.constant 0 : i32
    %c0_i32_1 = arith.constant 0 : i32
    %c0_i32_2 = arith.constant 0 : i32
    return %c0_i32, %c0_i32_0, %c0_i32_1 : i32, i32, i32
  }
  func.func @transform_4(%arg0: i32) -> (i32, i32, i32) {
    %c0_i32 = arith.constant 0 : i32
    %c0_i32_0 = arith.constant 0 : i32
    %c0_i32_1 = arith.constant 0 : i32
    %c0_i32_2 = arith.constant 0 : i32
    return %c0_i32, %c0_i32_0, %c0_i32_1 : i32, i32, i32
  }
  func.func @transform_5(%arg0: i32) -> (i32, i32, i32) {
    %c0_i32 = arith.constant 0 : i32
    %c0_i32_0 = arith.constant 0 : i32
    %c0_i32_1 = arith.constant 0 : i32
    return %arg0, %c0_i32, %c0_i32_0 : i32, i32, i32
  }
}

</mosaic_0001>

<bundles_post_ra>
// kernel: dcond_conv_forward.1
= control target key start
LH: loop header
LB: loop body
LE: loop exit
PB: predicated region body
PF: predicated region fallthrough
CT: control target
= control target key end

     0   :  { %s776_s18 = smov 0   ;;  %s921_s0 = inlined_call_operand.vmem [shape: f32[2,8,256], index: 0, kind: input, shape index: {}]   ;;  %s922_s1 = inlined_call_operand.vmem [shape: f32[4,8], index: 1, kind: input, shape index: {}]   ;;  %s923_s2 = inlined_call_operand.vmem [shape: f32[4,1], index: 2, kind: input, shape index: {}]   ;;  %s924_s3 = inlined_call_operand.vmem [shape: f32[4,8,72], index: 3, kind: input, shape index: {}]   ;;  %s925_s4 = inlined_call_operand.vmem [shape: f32[9,1,256], index: 4, kind: input, shape index: {}]   ;;  %s926_s5 = inlined_call_operand.vmem [shape: f32[2,8,256], index: 5, kind: output, shape index: {}]  }
   0x1 LB: > { %s673_s19 = sadd.s32 4294967295, %s735_s18   ;;  %p677_p0 = scmp.ge.s32.totalorder %s735_s18, 1  ;;  %s735_s18 = sphi %s776_s18, %s15_s18  }
   0x2   : > { %p187_p1 = scmp.lt.s32.totalorder %s735_s18, 3 }
   0x4   : > { %p188_p2 = pnand %p677_p0, %p187_p1 }
   0x5   : > { %p215_p3 = scmp.lt.s32.totalorder (!%p188_p2), %s673_s19, 1  ;;  %s738_s26 = smov (!%p188_p2), 77  }
   0x6   : > { %191 = sbr.rel (%p188_p2) target bundleno = 646 (0x286), region = 40  ;;  %s739_s27 = smov (!%p188_p2), 80  }
   0x7   : > { %s740_s28 = smov (!%p188_p2), 83   ;;  %s741_s29 = smov (!%p188_p2), 125  }
   0x8   : > { %s742_s30 = smov (!%p188_p2), 3   ;;  %s743_s6 = smov (!%p188_p2), 45  }
   0x9   : > { %s744_s7 = smov (!%p188_p2), 48   ;;  %s745_s8 = smov (!%p188_p2), 51  }
   0xb   : > { %v737_v0 = vmov 0.0   ;;  %s928_s19 = smov (!%p215_p3, %s673_s19), 1  ;;  %v225_v3 = vld [vmem:[%s922_s1] sm:$0xf]  ;;  %vm229_vm0 = vcmask 64512   ;;  %vm304_vm1 = vcmask 1043456   ;;  %v353_v14 = vlaneseq }
   0xc   : > { %297 = vmatprep.mubr.f32.mxu0 %v737_v0  ;;  %609 = vmatprep.mubr.f32.mxu1 %v737_v0  ;;  %s698_s20 = sshll.u32 %s928_s19, 4  ;;  %v693_v21 = vld [vmem:[%s925_s4 + $0xe] sm:$0x3]  ;;  %v694_v22 = vld [vmem:[%s925_s4 + $0x10] sm:$0x3]  ;;  %vm541_vm10 = vcmask 588800  }
   0xd   : > { %s219_s23 = scalar_lea.vmem %s921_s0, %s698_s20  ;;  %v361_v16 = vshrl.u32 %v353_v14, 7  ;;  %v817_v18 = vand.u32 127, %v353_v14  ;;  %v226_v23 = vld [vmem:[%s923_s2] sm:$0xf]  ;;  %v692_v27 = vld [vmem:[%s925_s4 + $0xc] sm:$0x3]  ;;  %s224_s24 = scalar_lea.vmem %s926_s5, %s698_s20 }
   0xe   : > { %v792_v1 = vld [vmem:[%s219_s23 + $0x8] sm:$0xff]  ;;  %v794_v2 = vld [vmem:[%s219_s23] sm:$0xff] }
   0xf   : > { %263 = vmatprep.subr.mxu0 %v792_v1  ;;  %521 = vrot.lane.b32.xlu1 %v792_v1, %s738_s26  ;;  %v819_v19 = vsub.s32 0, %v361_v16  ;;  %v821_v20 = vsub.s32 1, %v361_v16  ;;  %vm501_vm2 = vcmp.lt.s32.totalorder %v817_v18, 80  ;;  %vm523_vm3 = vcmp.lt.s32.totalorder %v817_v18, 77  ;;  %v691_v28 = vld [vmem:[%s925_s4 + $0xa] sm:$0x3] }
  0x10   : > { %264 = vmatpush1.msra.mxu0 %v794_v2  ;;  %vm479_vm4 = vcmp.lt.s32.totalorder %v817_v18, 83  ;;  %vm457_vm5 = vcmp.lt.s32.totalorder %v817_v18, 125  ;;  %v690_v44 = vld [vmem:[%s925_s4 + $0x8] sm:$0x3]  ;;  %v689_v53 = vld [vmem:[%s925_s4 + $0x6] sm:$0x3] }
  0x11   : > { %682 = vmatmul.mubr.msk.f32.vlgmr.msra.gmra.mxu0 %vm229_vm0, %v225_v3  ;;  %v514_v29 = vrot.slane %v693_v21, %v821_v20  ;;  %v536_v30 = vrot.slane %v694_v22, %v821_v20  ;;  %v532_v31 = vrot.slane %v694_v22, %v819_v19  ;;  %v510_v33 = vrot.slane %v693_v21, %v819_v19  ;;  %v688_v60 = vld [vmem:[%s925_s4 + $0x4] sm:$0x3] }
  0x12   : > { %v488_v37 = vrot.slane %v692_v27, %v819_v19  ;;  %v492_v38 = vrot.slane %v692_v27, %v821_v20  ;;  %v470_v39 = vrot.slane %v691_v28, %v821_v20  ;;  %v466_v51 = vrot.slane %v691_v28, %v819_v19 }
  0x13   : > { %497 = vrot.lane.b32.xlu1 %v794_v2, %s739_s27  ;;  %vm420_vm6 = vcmp.lt.s32.totalorder %v817_v18, 3  ;;  %v448_v57 = vrot.slane %v690_v44, %v821_v20  ;;  %v444_v59 = vrot.slane %v690_v44, %v819_v19  ;;  %v433_v62 = vrot.slane %v689_v53, %v821_v20 }
  0x14   : > { %vm398_vm7 = vcmp.lt.s32.totalorder %v817_v18, 45  ;;  %v429_v0 = vrot.slane %v689_v53, %v819_v19  ;;  %vm376_vm8 = vcmp.lt.s32.totalorder %v817_v18, 48  ;;  %vm355_vm9 = vcmp.lt.s32.totalorder %v817_v18, 51 }
  0x17   : > { %499 = vrot.lane.b32.xlu1 %v792_v1, %s739_s27 }
  0x1b   : > { %475 = vrot.lane.b32.xlu1 %v794_v2, %s740_s28 }
  0x1f   : > { %477 = vrot.lane.b32.xlu1 %v792_v1, %s740_s28 }
  0x23   : > { %453 = vrot.lane.b32.xlu1 %v794_v2, %s741_s29 }
  0x27   : > { %455 = vrot.lane.b32.xlu1 %v792_v1, %s741_s29 }
  0x2b   : > { %418 = vrot.lane.b32.xlu1 %v792_v1, %s742_s30 }
  0x2f   : > { %396 = vrot.lane.b32.xlu1 %v792_v1, %s743_s6 }
  0x33   : > { %374 = vrot.lane.b32.xlu1 %v792_v1, %s744_s7 }
  0x37   : > { %351 = vrot.lane.b32.xlu1 %v792_v1, %s745_s8 }
  0x81   : > { %v522_v9 = vpop.permute.xlu1 %521 }
  0x85   : > { %v498_v10 = vpop.permute.xlu1 %497 }
  0x89   : > { %v500_v11 = vpop.permute.xlu1 %499 }
  0x8a   : > { %v503_v34 = vsel %vm501_vm2, %v500_v11, %v498_v10  ;;  %v502_v36 = vsel %vm501_vm2, %v498_v10, %v500_v11  ;;  %v451_v10 = vmul.f32 %v444_v59, %v794_v2  ;;  %v407_v11 = vrot.slane %v688_v60, %v819_v19 }
  0x8b   : > { %v518_v45 = vmul.f32 %v514_v29, %v503_v34  ;;  %v517_v50 = vmul.f32 %v510_v33, %v502_v36 }
  0x8d   : > { %v476_v12 = vpop.permute.xlu1 %475 }
  0x91   : > { %v478_v13 = vpop.permute.xlu1 %477 }
  0x92   : > { %v481_v43 = vsel %vm479_vm4, %v478_v13, %v476_v12  ;;  %v480_v48 = vsel %vm479_vm4, %v476_v12, %v478_v13 }
  0x93   : > { %v496_v54 = vmul.f32 %v492_v38, %v481_v43  ;;  %v495_v58 = vmul.f32 %v488_v37, %v480_v48  ;;  %v319_v38 = vld [vmem:[%s924_s3] sm:$0xff] }
  0x95   : > { %v454_v15 = vpop.permute.xlu1 %453 }
  0x99   : > { %v456_v17 = vpop.permute.xlu1 %455 }
  0x9a   : > { %v459_v52 = vsel %vm457_vm5, %v456_v17, %v454_v15  ;;  %v458_v55 = vsel %vm457_vm5, %v454_v15, %v456_v17 }
  0x9b   : > { %v474_v61 = vmul.f32 %v470_v39, %v459_v52  ;;  %v473_v63 = vmul.f32 %v466_v51, %v458_v55 }
  0x9d   : > { %v419_v25 = vpop.permute.xlu1 %418 }
  0xa1   : > { %v397_v49 = vpop.permute.xlu1 %396 }
  0xd1   : > { %v299_v4 = vpop.f32.mrf.mxu0 }
  0xd2   : > { %v305_v6 = vsel %vm304_vm1, %v299_v4, 0.0  ;;  %v687_v4 = vld [vmem:[%s925_s4 + $0x2] sm:$0x3] }
  0xd3   : > { %v301_v5 = vpop.f32.mrf.mxu0  ;;  %v385_v16 = vrot.slane %v687_v4, %v819_v19 }
  0xd4   : > { %v306_v7 = vsel %vm304_vm1, %v301_v5, 0.0 }
  0xd5   : > { %v307_v8 = vadd.f32 %v306_v7, %v305_v6  ;;  %v452_v6 = vmul.f32 %v448_v57, %v792_v1  ;;  %v411_v7 = vrot.slane %v688_v60, %v821_v20  ;;  %v389_v1 = vrot.slane %v687_v4, %v821_v20 }
  0xd7   : > { %308 = vadd.xlane.f32.xlu0 %v307_v8 }
  0xed   : > { %519 = vrot.lane.b32.xlu0 %v794_v2, %s738_s26 }
  0xf1   : > { %416 = vrot.lane.b32.xlu0 %v794_v2, %s742_s30 }
  0xf5   : > { %394 = vrot.lane.b32.xlu0 %v794_v2, %s743_s6 }
  0xf9   : > { %372 = vrot.lane.b32.xlu0 %v794_v2, %s744_s7 }
  0xfd   : > { %349 = vrot.lane.b32.xlu0 %v794_v2, %s745_s8  ;;  %v358_v2 = vld [vmem:[%s925_s4] sm:$0x3] }
  0xfe   : > { %v363_v27 = vrot.slane %v358_v2, %v819_v19  ;;  %v367_v28 = vrot.slane %v358_v2, %v821_v20 }
 0x160   : > { %v309_v24 = vpop.xlane.xlu0 %308 }
 0x161   : > { %v311_v26 = vmul.f32 0.00390625, %v309_v24 }
 0x163   : > { %v312_v32 = vadd.f32 %v311_v26, %v226_v23 }
 0x164   : > { %v520_v35 = vpop.permute.xlu0 %519 }
 0x165   : > { %v683_v40 = vmul.f32 -1.442695, %v312_v32  ;;  %v524_v41 = vsel %vm523_vm3, %v520_v35, %v522_v9  ;;  %v525_v42 = vsel %vm523_vm3, %v522_v9, %v520_v35  ;;  %v375_v9 = vpop.permute.xlu1 %374 }
 0x166   : > { %v540_v46 = vmul.f32 %v536_v30, %v525_v42  ;;  %v539_v47 = vmul.f32 %v532_v31, %v524_v41  ;;  %v685_v42 = vld [vmem:[%s924_s3 + $0x10] sm:$0xff] }
 0x167   : > { %725 = vpow2.f32 %v683_v40  ;;  %v684_v40 = vld [vmem:[%s924_s3 + $0x8] sm:$0xff] }
 0x168   : > { %559 = vmatprep.subr.mxu1 %v540_v46  ;;  %v417_v56 = vpop.permute.xlu0 %416  ;;  %v686_v46 = vld [vmem:[%s924_s3 + $0x18] sm:$0xff] }
 0x169   : > { %560 = vmatpush1.msra.mxu1 %v539_v47  ;;  %v421_v3 = vsel %vm420_vm6, %v417_v56, %v419_v25  ;;  %v422_v5 = vsel %vm420_vm6, %v419_v25, %v417_v56  ;;  %v352_v26 = vpop.permute.xlu1 %351 }
 0x16a   : > { %561 = vmatprep.subr.mxu1 %v518_v45  ;;  %v437_v13 = vmul.f32 %v433_v62, %v421_v3  ;;  %v436_v15 = vmul.f32 %v429_v0, %v422_v5 }
 0x16b   : > { %562 = vmatpush1.msra.mxu1 %v517_v50 }
 0x16c   : > { %563 = vmatprep.subr.mxu1 %v496_v54  ;;  %v395_v8 = vpop.permute.xlu0 %394 }
 0x16d   : > { %564 = vmatpush1.msra.mxu1 %v495_v58  ;;  %v399_v12 = vsel %vm398_vm7, %v395_v8, %v397_v49  ;;  %v400_v14 = vsel %vm398_vm7, %v397_v49, %v395_v8 }
 0x16e   : > { %565 = vmatprep.subr.mxu1 %v474_v61  ;;  %v415_v17 = vmul.f32 %v411_v7, %v399_v12  ;;  %v414_v22 = vmul.f32 %v407_v11, %v400_v14 }
 0x16f   : > { %566 = vmatpush1.msra.mxu1 %v473_v63 }
 0x170   : > { %567 = vmatprep.subr.mxu1 %v452_v6  ;;  %v373_v21 = vpop.permute.xlu0 %372 }
 0x171   : > { %568 = vmatpush1.msra.mxu1 %v451_v10  ;;  %v377_v23 = vsel %vm376_vm8, %v373_v21, %v375_v9  ;;  %v378_v24 = vsel %vm376_vm8, %v375_v9, %v373_v21 }
 0x172   : > { %569 = vmatprep.subr.mxu1 %v437_v13  ;;  %v393_v25 = vmul.f32 %v389_v1, %v377_v23  ;;  %v392_v29 = vmul.f32 %v385_v16, %v378_v24 }
 0x173   : > { %570 = vmatpush1.msra.mxu1 %v436_v15 }
 0x174   : > { %v726_v30 = vpop.eup %725  ;;  %571 = vmatprep.subr.mxu1 %v415_v17  ;;  %v350_v31 = vpop.permute.xlu0 %349 }
 0x175   : > { %v316_v32 = vadd.f32 1.0, %v726_v30  ;;  %572 = vmatpush1.msra.mxu1 %v414_v22  ;;  %v356_v33 = vsel %vm355_vm9, %v350_v31, %v352_v26  ;;  %v357_v34 = vsel %vm355_vm9, %v352_v26, %v350_v31 }
 0x176   : > { %573 = vmatprep.subr.mxu1 %v393_v25  ;;  %v370_v35 = vmul.f32 %v363_v27, %v357_v34  ;;  %v371_v36 = vmul.f32 %v367_v28, %v356_v33 }
 0x177   : > { %727 = vrcp.f32 %v316_v32  ;;  %574 = vmatpush1.msra.mxu1 %v392_v29 }
 0x178   : > { %575 = vmatprep.subr.mxu1 %v371_v36 }
 0x179   : > { %576 = vmatpush1.msra.mxu1 %v370_v35 }
 0x184   : > { %v728_v18 = vpop.eup %727 }
 0x185   : > { %700 = vpush %v728_v18  ;;  %v327_v19 = vrot.slane %v728_v18, 1  ;;  %v335_v20 = vrot.slane %v728_v18, 2  ;;  %v343_v37 = vrot.slane %v728_v18, 3 }
 0x187   : > { %702 = vpush %v327_v19 }
 0x188   : > { %704 = vpush %v335_v20 }
 0x189   : > { %706 = vpush %v343_v37 }
 0x1b6   : > { %s701_s7 = spop %700 }
 0x1b7   : > { %v322_v39 = vstv %s701_s7 }
 0x1b8   : > { %s703_s12 = spop %702  ;;  %v324_v43 = vmul.f32 %v322_v39, %v319_v38 }
 0x1b9   : > { %v329_v41 = vstv %s703_s12  ;;  %s705_s15 = spop %704 }
 0x1ba   : > { %v331_v44 = vmul.f32 %v684_v40, %v329_v41  ;;  %v337_v45 = vstv %s705_s15  ;;  %s707_s16 = spop %706 }
 0x1bb   : > { %v345_v47 = vstv %s707_s16  ;;  %v339_v49 = vmul.f32 %v685_v42, %v337_v45 }
 0x1bc   : > { %v332_v48 = vadd.f32 %v331_v44, %v324_v43  ;;  %v347_v51 = vmul.f32 %v686_v46, %v345_v47 }
 0x1be   : > { %v340_v50 = vadd.f32 %v339_v49, %v332_v48 }
 0x1c0   : > { %v348_v52 = vadd.f32 %v347_v51, %v340_v50 }
 0x1c2   : > { %695 = vmatmul.mubr.msk.f32.vlgmr.msra.gmra.mxu1 %vm541_vm10, %v348_v52 }
 0x282   : > { %v611_v53 = vpop.f32.mrf.mxu1 }
 0x283   : > { %616 = vst [vmem:[%s224_s24] sm:$0xff] %v611_v53 }
 0x284   : > { %v613_v54 = vpop.f32.mrf.mxu1 }
 0x285   : > { %617 = vst [vmem:[%s224_s24 + $0x8] sm:$0xff] %v613_v54 }
 0x286 PF: > { %s15_s18 = sadd.s32 1, %s735_s18  }
 0x287   : > { %p12_p4 = scmp.ge.s32.totalorder %s15_s18, 4  }
 0x289   :  { %14 = sbr.rel (!%p12_p4) target bundleno = 1 (0x1), region = 81 }

</bundles_post_ra>
